<compile_context>
chip_gen: v7x
topology: tpu7x:2x2x1
jax: 0.10.0
libtpu: 0.0.40
codegen_flags: <defaults>
</compile_context>

<pallas_src>
import functools

import jax
import jax.numpy as jnp
from jax import lax
from jax.experimental import pallas as pl
from jax.experimental.pallas import tpu as pltpu


def _basic_block_kernel(x_ref, w1_ref, b1_ref, w2_ref, b2_ref, mask_ref,
                        out_ref, patch_ref, mid_ref, *, wp, ext):
    """One batch-chunk per grid step, all data lane-dense.

    x_ref    : (1, Cin, L)      zero-extended, padded, batch-folded input
                                 (L = N + 2*ext, N = Bt * Hp * Wp)
    w1_ref   : (Cout, 9*Cin)    conv1 weights, BN1 scale folded in
    b1_ref   : (Cout, 1)        folded BN1 bias
    w2_ref   : (Cout, 9*Cout)   conv2 weights, BN2 scale folded in
    b2_ref   : (Cout, 1)        folded BN2 bias
    mask_ref : (1, N)           1.0 at valid output pixels, 0.0 on the pad ring
    out_ref  : (1, Cout, N)
    patch_ref: (9*Cin, N)       im2col scratch (reused for both convs)
    mid_ref  : (Cout, L)        zero-extended conv2 input scratch
    """
    cin = x_ref.shape[1]
    _, cout, n = out_ref.shape

    taps = [(ky, kx) for ky in range(3) for kx in range(3)]

    # ---- conv1: build im2col patch once, single K = 9*Cin matmul on the MXU ----
    for t, (ky, kx) in enumerate(taps):
        off = ext + (ky - 1) * wp + (kx - 1)          # static lane offset per tap
        patch_ref[t * cin:(t + 1) * cin, :] = x_ref[0, :, off:off + n]
    h = jnp.dot(w1_ref[...], patch_ref[...], preferred_element_type=jnp.float32)

    # ---- BN1 bias (scale already folded into w1) + ReLU + zero the pad ring ----
    h = jnp.maximum(h + b1_ref[...], 0.0) * mask_ref[...]

    # mid = zero-extended conv2 input; only the two small end strips need zeroing,
    # the interior (incl. the ring, via the mask) is fully rewritten every step.
    mid_ref[:, 0:ext] = jnp.zeros((cout, ext), jnp.float32)
    mid_ref[:, ext + n:2 * ext + n] = jnp.zeros((cout, ext), jnp.float32)
    mid_ref[:, ext:ext + n] = h

    # ---- conv2: same im2col + single matmul ----
    for t, (ky, kx) in enumerate(taps):
        off = ext + (ky - 1) * wp + (kx - 1)
        patch_ref[t * cout:(t + 1) * cout, :] = mid_ref[:, off:off + n]
    o = jnp.dot(w2_ref[...], patch_ref[...], preferred_element_type=jnp.float32)

    # ---- BN2 bias + residual add + ReLU ----
    res = x_ref[0, :, ext:ext + n]                     # residual = x (Cin == Cout)
    out_ref[0] = jnp.maximum(o + b2_ref[...] + res, 0.0).astype(out_ref.dtype)


def _fold_bn(gamma, beta, mean, var, eps=1e-5):
    scale = gamma / jnp.sqrt(var + eps)
    bias = beta - mean * scale
    return scale, bias


@functools.partial(jax.jit, static_argnames=("batch_per_step",))
def basic_block_pallas(x_nchw, w1_oihw, bn1, w2_oihw, bn2, *, batch_per_step=None):
    """x_nchw: (B, Cin, H, W); conv weights in PyTorch OIHW; bn = (gamma, beta, mean, var)."""
    B, Cin, H, W = x_nchw.shape
    Cout = w1_oihw.shape[0]
    assert Cin == Cout, "residual path requires inplanes == planes (no downsample)"

    bt = B if batch_per_step is None else batch_per_step
    assert B % bt == 0
    nchunks = B // bt

    Hp, Wp = H + 2, W + 2
    npos = Hp * Wp                 # padded positions per batch element
    ext = Wp + 1                   # max |tap offset| on the flattened padded axis
    n = bt * npos                  # lane-axis width per grid step
    L = n + 2 * ext

    f32 = jnp.float32
    x = x_nchw.astype(f32)

    # ---- glue (plain JAX, no NCHW<->NHWC transpose): pad, flatten spatial,
    #      fold batch into the lane axis, add `ext` zero columns at both ends. ----
    xp = jnp.pad(x, ((0, 0), (0, 0), (1, 1), (1, 1)))               # (B,C,Hp,Wp)
    xp = xp.reshape(nchunks, bt, Cin, npos).transpose(0, 2, 1, 3)   # (nc,C,bt,npos)
    xp = xp.reshape(nchunks, Cin, n)
    x_ext = jnp.pad(xp, ((0, 0), (0, 0), (ext, ext)))               # (nc,C,L)

    # ---- fold BN scale into conv weights; reorder to (Cout, 9*Cin) ----
    s1, b1 = _fold_bn(*bn1)
    s2, b2 = _fold_bn(*bn2)
    w1 = (w1_oihw.astype(f32) * s1[:, None, None, None])
    w1 = w1.transpose(0, 2, 3, 1).reshape(Cout, 9 * Cin)            # [co, (ky,kx,ci)]
    w2 = (w2_oihw.astype(f32) * s2[:, None, None, None])
    w2 = w2.transpose(0, 2, 3, 1).reshape(Cout, 9 * Cout)
    b1 = b1.reshape(Cout, 1).astype(f32)
    b2 = b2.reshape(Cout, 1).astype(f32)

    # interior mask: 1 at valid output pixels, 0 on the 1-px pad ring; tiled per batch
    m = jnp.pad(jnp.ones((H, W), f32), ((1, 1), (1, 1))).reshape(1, npos)
    mask = jnp.tile(m, (1, bt))                                     # (1, n)

    kern = functools.partial(_basic_block_kernel, wp=Wp, ext=ext)

    flops = 2 * 2 * 9 * Cin * Cout * B * npos
    bytes_acc = 4 * (x_ext.size + nchunks * Cout * n + w1.size + w2.size
                     + mask.size + 2 * Cout)

    out = pl.pallas_call(
        kern,
        out_shape=jax.ShapeDtypeStruct((nchunks, Cout, n), f32),
        grid_spec=pltpu.PrefetchScalarGridSpec(
            num_scalar_prefetch=0,
            grid=(nchunks,),
            in_specs=[
                pl.BlockSpec((1, Cin, L), lambda c: (c, 0, 0)),
                pl.BlockSpec((Cout, 9 * Cin), lambda c: (0, 0)),
                pl.BlockSpec((Cout, 1), lambda c: (0, 0)),
                pl.BlockSpec((Cout, 9 * Cout), lambda c: (0, 0)),
                pl.BlockSpec((Cout, 1), lambda c: (0, 0)),
                pl.BlockSpec((1, n), lambda c: (0, 0)),
            ],
            out_specs=pl.BlockSpec((1, Cout, n), lambda c: (c, 0, 0)),
            scratch_shapes=[
                pltpu.VMEM((9 * Cin, n), jnp.float32),   # im2col patch (reused)
                pltpu.VMEM((Cout, L), jnp.float32),      # zero-extended mid
            ],
        ),
        compiler_params=pltpu.CompilerParams(
            dimension_semantics=("parallel",)),          # v7x: shard chunks over 2 TCs
        cost_estimate=pl.CostEstimate(flops=flops, transcendentals=0,
                                      bytes_accessed=bytes_acc),
    )(x_ext, w1, b1, w2, b2, mask)

    # (nc, Cout, bt*npos) -> (B, Cout, Hp, Wp) -> crop the pad ring -> NCHW
    out = out.reshape(nchunks, Cout, bt, Hp, Wp).transpose(0, 2, 1, 3, 4)
    out = out.reshape(B, Cout, Hp, Wp)[:, :, 1:H + 1, 1:W + 1]
    return out


def _reference_basic_block(x_nchw, w1_oihw, bn1, w2_oihw, bn2):
    """Pure-JAX reference (lax conv), same eval-mode BN semantics."""
    def conv(x, w_oihw):
        return lax.conv_general_dilated(
            x, w_oihw, window_strides=(1, 1), padding=((1, 1), (1, 1)),
            dimension_numbers=("NCHW", "OIHW", "NCHW"))

    def bn(x, params):
        g, b, m, v = params
        s = g / jnp.sqrt(v + 1e-5)
        return x * s[None, :, None, None] + (b - m * s)[None, :, None, None]

    out = jax.nn.relu(bn(conv(x_nchw, w1_oihw), bn1))
    out = bn(conv(out, w2_oihw), bn2)
    return jax.nn.relu(out + x_nchw)


if __name__ == "__main__":
    B, C, H, W = 2, 8, 16, 16   # inplanes == planes, stride=1, downsample=None
    key = jax.random.PRNGKey(0)
    kx, kw1, kw2, kg1, kb1, km1, kv1, kg2, kb2, km2, kv2 = jax.random.split(key, 11)

    x = jax.random.normal(kx, (B, C, H, W), jnp.float32)
    w1 = jax.random.normal(kw1, (C, C, 3, 3), jnp.float32) * 0.1   # conv1 OIHW
    w2 = jax.random.normal(kw2, (C, C, 3, 3), jnp.float32) * 0.1   # conv2 OIHW
    bn1 = (1.0 + 0.1 * jax.random.normal(kg1, (C,), jnp.float32),
           0.1 * jax.random.normal(kb1, (C,), jnp.float32),
           0.1 * jax.random.normal(km1, (C,), jnp.float32),
           jnp.abs(jax.random.normal(kv1, (C,), jnp.float32)) + 0.5)
    bn2 = (1.0 + 0.1 * jax.random.normal(kg2, (C,), jnp.float32),
           0.1 * jax.random.normal(kb2, (C,), jnp.float32),
           0.1 * jax.random.normal(km2, (C,), jnp.float32),
           jnp.abs(jax.random.normal(kv2, (C,), jnp.float32)) + 0.5)

    out = basic_block_pallas(x, w1, bn1, w2, bn2)
    out = jax.block_until_ready(out)

    ref = _reference_basic_block(x, w1, bn1, w2, bn2)
    assert out.shape == (B, C, H, W)
    assert jnp.allclose(out, ref, atol=1e-3, rtol=1e-3), "mismatch vs JAX reference"

    print("KERNEL_OK")
</pallas_src>

<mosaic_0001>
module attributes {stable_mosaic.version = 11 : i64} {
  func.func @_basic_block_kernel(%arg0: i32, %arg1: memref<1x8x686xf32, #tpu.memory_space<vmem>>, %arg2: memref<8x72xf32, #tpu.memory_space<vmem>>, %arg3: memref<8x1xf32, #tpu.memory_space<vmem>>, %arg4: memref<8x72xf32, #tpu.memory_space<vmem>>, %arg5: memref<8x1xf32, #tpu.memory_space<vmem>>, %arg6: memref<1x648xf32, #tpu.memory_space<vmem>>, %arg7: memref<1x8x648xf32, #tpu.memory_space<vmem>>, %arg8: memref<72x648xf32, #tpu.memory_space<vmem>>, %arg9: memref<8x686xf32, #tpu.memory_space<vmem>>) attributes {dimension_semantics = [#tpu.dimension_semantics<parallel>], iteration_bounds = array<i64: 1>, scalar_prefetch = 0 : i64, scratch_operands = 2 : i64, tpu.core_type = #tpu.core_type<tc>, window_params = [{transform_indices = @transform_0, window_bounds = array<i64: 1, 8, 686>}, {pipeline_mode = #tpu.pipeline_mode<synchronous>, transform_indices = @transform_1, window_bounds = array<i64: 8, 72>}, {pipeline_mode = #tpu.pipeline_mode<synchronous>, transform_indices = @transform_2, window_bounds = array<i64: 8, 1>}, {pipeline_mode = #tpu.pipeline_mode<synchronous>, transform_indices = @transform_3, window_bounds = array<i64: 8, 72>}, {pipeline_mode = #tpu.pipeline_mode<synchronous>, transform_indices = @transform_4, window_bounds = array<i64: 8, 1>}, {pipeline_mode = #tpu.pipeline_mode<synchronous>, transform_indices = @transform_5, window_bounds = array<i64: 1, 648>}, {transform_indices = @transform_6, window_bounds = array<i64: 1, 8, 648>}]} {
    %c0 = arith.constant 0 : index
    %c0_0 = arith.constant 0 : index
    %c0_1 = arith.constant 0 : index
    %0 = vector.load %arg1[%c0, %c0_0, %c0_1] : memref<1x8x686xf32, #tpu.memory_space<vmem>>, vector<1x8x648xf32>
    %1 = vector.shape_cast %0 : vector<1x8x648xf32> to vector<8x648xf32>
    %c0_2 = arith.constant 0 : index
    %c0_3 = arith.constant 0 : index
    %2 = vector.load %arg8[%c0_2, %c0_3] : memref<72x648xf32, #tpu.memory_space<vmem>>, vector<8x648xf32>
    tpu.vector_store %arg8[%c0_2, %c0_3], %1 {strides = array<i32>} : memref<72x648xf32, #tpu.memory_space<vmem>>, vector<8x648xf32>,
    %c0_4 = arith.constant 0 : index
    %c0_5 = arith.constant 0 : index
    %c1 = arith.constant 1 : index
    %3 = vector.load %arg1[%c0_4, %c0_5, %c1] : memref<1x8x686xf32, #tpu.memory_space<vmem>>, vector<1x8x648xf32>
    %4 = vector.shape_cast %3 : vector<1x8x648xf32> to vector<8x648xf32>
    %c8 = arith.constant 8 : index
    %c0_6 = arith.constant 0 : index
    %5 = vector.load %arg8[%c8, %c0_6] : memref<72x648xf32, #tpu.memory_space<vmem>>, vector<8x648xf32>
    tpu.vector_store %arg8[%c8, %c0_6], %4 {strides = array<i32>} : memref<72x648xf32, #tpu.memory_space<vmem>>, vector<8x648xf32>,
    %c0_7 = arith.constant 0 : index
    %c0_8 = arith.constant 0 : index
    %c2 = arith.constant 2 : index
    %6 = vector.load %arg1[%c0_7, %c0_8, %c2] : memref<1x8x686xf32, #tpu.memory_space<vmem>>, vector<1x8x648xf32>
    %7 = vector.shape_cast %6 : vector<1x8x648xf32> to vector<8x648xf32>
    %c16 = arith.constant 16 : index
    %c0_9 = arith.constant 0 : index
    %8 = vector.load %arg8[%c16, %c0_9] : memref<72x648xf32, #tpu.memory_space<vmem>>, vector<8x648xf32>
    tpu.vector_store %arg8[%c16, %c0_9], %7 {strides = array<i32>} : memref<72x648xf32, #tpu.memory_space<vmem>>, vector<8x648xf32>,
    %c0_10 = arith.constant 0 : index
    %c0_11 = arith.constant 0 : index
    %c18 = arith.constant 18 : index
    %9 = vector.load %arg1[%c0_10, %c0_11, %c18] : memref<1x8x686xf32, #tpu.memory_space<vmem>>, vector<1x8x648xf32>
    %10 = vector.shape_cast %9 : vector<1x8x648xf32> to vector<8x648xf32>
    %c24 = arith.constant 24 : index
    %c0_12 = arith.constant 0 : index
    %11 = vector.load %arg8[%c24, %c0_12] : memref<72x648xf32, #tpu.memory_space<vmem>>, vector<8x648xf32>
    tpu.vector_store %arg8[%c24, %c0_12], %10 {strides = array<i32>} : memref<72x648xf32, #tpu.memory_space<vmem>>, vector<8x648xf32>,
    %c0_13 = arith.constant 0 : index
    %c0_14 = arith.constant 0 : index
    %c19 = arith.constant 19 : index
    %12 = vector.load %arg1[%c0_13, %c0_14, %c19] : memref<1x8x686xf32, #tpu.memory_space<vmem>>, vector<1x8x648xf32>
    %13 = vector.shape_cast %12 : vector<1x8x648xf32> to vector<8x648xf32>
    %c32 = arith.constant 32 : index
    %c0_15 = arith.constant 0 : index
    %14 = vector.load %arg8[%c32, %c0_15] : memref<72x648xf32, #tpu.memory_space<vmem>>, vector<8x648xf32>
    tpu.vector_store %arg8[%c32, %c0_15], %13 {strides = array<i32>} : memref<72x648xf32, #tpu.memory_space<vmem>>, vector<8x648xf32>,
    %c0_16 = arith.constant 0 : index
    %c0_17 = arith.constant 0 : index
    %c20 = arith.constant 20 : index
    %15 = vector.load %arg1[%c0_16, %c0_17, %c20] : memref<1x8x686xf32, #tpu.memory_space<vmem>>, vector<1x8x648xf32>
    %16 = vector.shape_cast %15 : vector<1x8x648xf32> to vector<8x648xf32>
    %c40 = arith.constant 40 : index
    %c0_18 = arith.constant 0 : index
    %17 = vector.load %arg8[%c40, %c0_18] : memref<72x648xf32, #tpu.memory_space<vmem>>, vector<8x648xf32>
    tpu.vector_store %arg8[%c40, %c0_18], %16 {strides = array<i32>} : memref<72x648xf32, #tpu.memory_space<vmem>>, vector<8x648xf32>,
    %c0_19 = arith.constant 0 : index
    %c0_20 = arith.constant 0 : index
    %c36 = arith.constant 36 : index
    %18 = vector.load %arg1[%c0_19, %c0_20, %c36] : memref<1x8x686xf32, #tpu.memory_space<vmem>>, vector<1x8x648xf32>
    %19 = vector.shape_cast %18 : vector<1x8x648xf32> to vector<8x648xf32>
    %c48 = arith.constant 48 : index
    %c0_21 = arith.constant 0 : index
    %20 = vector.load %arg8[%c48, %c0_21] : memref<72x648xf32, #tpu.memory_space<vmem>>, vector<8x648xf32>
    tpu.vector_store %arg8[%c48, %c0_21], %19 {strides = array<i32>} : memref<72x648xf32, #tpu.memory_space<vmem>>, vector<8x648xf32>,
    %c0_22 = arith.constant 0 : index
    %c0_23 = arith.constant 0 : index
    %c37 = arith.constant 37 : index
    %21 = vector.load %arg1[%c0_22, %c0_23, %c37] : memref<1x8x686xf32, #tpu.memory_space<vmem>>, vector<1x8x648xf32>
    %22 = vector.shape_cast %21 : vector<1x8x648xf32> to vector<8x648xf32>
    %c56 = arith.constant 56 : index
    %c0_24 = arith.constant 0 : index
    %23 = vector.load %arg8[%c56, %c0_24] : memref<72x648xf32, #tpu.memory_space<vmem>>, vector<8x648xf32>
    tpu.vector_store %arg8[%c56, %c0_24], %22 {strides = array<i32>} : memref<72x648xf32, #tpu.memory_space<vmem>>, vector<8x648xf32>,
    %c0_25 = arith.constant 0 : index
    %c0_26 = arith.constant 0 : index
    %c38 = arith.constant 38 : index
    %24 = vector.load %arg1[%c0_25, %c0_26, %c38] : memref<1x8x686xf32, #tpu.memory_space<vmem>>, vector<1x8x648xf32>
    %25 = vector.shape_cast %24 : vector<1x8x648xf32> to vector<8x648xf32>
    %c64 = arith.constant 64 : index
    %c0_27 = arith.constant 0 : index
    %26 = vector.load %arg8[%c64, %c0_27] : memref<72x648xf32, #tpu.memory_space<vmem>>, vector<8x648xf32>
    tpu.vector_store %arg8[%c64, %c0_27], %25 {strides = array<i32>} : memref<72x648xf32, #tpu.memory_space<vmem>>, vector<8x648xf32>,
    %c0_28 = arith.constant 0 : index
    %c0_29 = arith.constant 0 : index
    %27 = vector.load %arg2[%c0_28, %c0_29] : memref<8x72xf32, #tpu.memory_space<vmem>>, vector<8x72xf32>
    %c0_30 = arith.constant 0 : index
    %c0_31 = arith.constant 0 : index
    %28 = vector.load %arg8[%c0_30, %c0_31] : memref<72x648xf32, #tpu.memory_space<vmem>>, vector<72x648xf32>
    %cst = arith.constant dense<0.000000e+00> : vector<8x648xf32>
    %29 = tpu.matmul %27, %28, %cst {dimension_numbers = #tpu.dot_dimension_numbers<[1], [0], [0], [1], [0, 0, 1, 1], [], []>} : vector<8x72xf32>, vector<72x648xf32>, vector<8x648xf32> -> vector<8x648xf32>
    %c0_32 = arith.constant 0 : index
    %c0_33 = arith.constant 0 : index
    %30 = vector.load %arg3[%c0_32, %c0_33] : memref<8x1xf32, #tpu.memory_space<vmem>>, vector<8x1xf32>
    %31 = vector.broadcast %30 : vector<8x1xf32> to vector<8x648xf32>
    %32 = arith.addf %29, %31 : vector<8x648xf32>
    %cst_34 = arith.constant 0.000000e+00 : f32
    %33 = vector.broadcast %cst_34 : f32 to vector<8x648xf32>
    %34 = arith.maximumf %32, %33 : vector<8x648xf32>
    %c0_35 = arith.constant 0 : index
    %c0_36 = arith.constant 0 : index
    %35 = vector.load %arg6[%c0_35, %c0_36] : memref<1x648xf32, #tpu.memory_space<vmem>>, vector<1x648xf32>
    %36 = vector.broadcast %35 : vector<1x648xf32> to vector<8x648xf32>
    %37 = arith.mulf %34, %36 : vector<8x648xf32>
    %cst_37 = arith.constant 0.000000e+00 : f32
    %38 = vector.broadcast %cst_37 : f32 to vector<8x19xf32>
    %c0_38 = arith.constant 0 : index
    %c0_39 = arith.constant 0 : index
    %39 = vector.load %arg9[%c0_38, %c0_39] : memref<8x686xf32, #tpu.memory_space<vmem>>, vector<8x19xf32>
    tpu.vector_store %arg9[%c0_38, %c0_39], %38 {strides = array<i32>} : memref<8x686xf32, #tpu.memory_space<vmem>>, vector<8x19xf32>,
    %cst_40 = arith.constant 0.000000e+00 : f32
    %40 = vector.broadcast %cst_40 : f32 to vector<8x19xf32>
    %c0_41 = arith.constant 0 : index
    %c667 = arith.constant 667 : index
    %41 = vector.load %arg9[%c0_41, %c667] : memref<8x686xf32, #tpu.memory_space<vmem>>, vector<8x19xf32>
    tpu.vector_store %arg9[%c0_41, %c667], %40 {strides = array<i32>} : memref<8x686xf32, #tpu.memory_space<vmem>>, vector<8x19xf32>,
    %c0_42 = arith.constant 0 : index
    %c19_43 = arith.constant 19 : index
    %42 = vector.load %arg9[%c0_42, %c19_43] : memref<8x686xf32, #tpu.memory_space<vmem>>, vector<8x648xf32>
    tpu.vector_store %arg9[%c0_42, %c19_43], %37 {strides = array<i32>} : memref<8x686xf32, #tpu.memory_space<vmem>>, vector<8x648xf32>,
    %c0_44 = arith.constant 0 : index
    %c0_45 = arith.constant 0 : index
    %43 = vector.load %arg9[%c0_44, %c0_45] : memref<8x686xf32, #tpu.memory_space<vmem>>, vector<8x648xf32>
    %c0_46 = arith.constant 0 : index
    %c0_47 = arith.constant 0 : index
    %44 = vector.load %arg8[%c0_46, %c0_47] : memref<72x648xf32, #tpu.memory_space<vmem>>, vector<8x648xf32>
    tpu.vector_store %arg8[%c0_46, %c0_47], %43 {strides = array<i32>} : memref<72x648xf32, #tpu.memory_space<vmem>>, vector<8x648xf32>,
    %c0_48 = arith.constant 0 : index
    %c1_49 = arith.constant 1 : index
    %45 = vector.load %arg9[%c0_48, %c1_49] : memref<8x686xf32, #tpu.memory_space<vmem>>, vector<8x648xf32>
    %c8_50 = arith.constant 8 : index
    %c0_51 = arith.constant 0 : index
    %46 = vector.load %arg8[%c8_50, %c0_51] : memref<72x648xf32, #tpu.memory_space<vmem>>, vector<8x648xf32>
    tpu.vector_store %arg8[%c8_50, %c0_51], %45 {strides = array<i32>} : memref<72x648xf32, #tpu.memory_space<vmem>>, vector<8x648xf32>,
    %c0_52 = arith.constant 0 : index
    %c2_53 = arith.constant 2 : index
    %47 = vector.load %arg9[%c0_52, %c2_53] : memref<8x686xf32, #tpu.memory_space<vmem>>, vector<8x648xf32>
    %c16_54 = arith.constant 16 : index
    %c0_55 = arith.constant 0 : index
    %48 = vector.load %arg8[%c16_54, %c0_55] : memref<72x648xf32, #tpu.memory_space<vmem>>, vector<8x648xf32>
    tpu.vector_store %arg8[%c16_54, %c0_55], %47 {strides = array<i32>} : memref<72x648xf32, #tpu.memory_space<vmem>>, vector<8x648xf32>,
    %c0_56 = arith.constant 0 : index
    %c18_57 = arith.constant 18 : index
    %49 = vector.load %arg9[%c0_56, %c18_57] : memref<8x686xf32, #tpu.memory_space<vmem>>, vector<8x648xf32>
    %c24_58 = arith.constant 24 : index
    %c0_59 = arith.constant 0 : index
    %50 = vector.load %arg8[%c24_58, %c0_59] : memref<72x648xf32, #tpu.memory_space<vmem>>, vector<8x648xf32>
    tpu.vector_store %arg8[%c24_58, %c0_59], %49 {strides = array<i32>} : memref<72x648xf32, #tpu.memory_space<vmem>>, vector<8x648xf32>,
    %c0_60 = arith.constant 0 : index
    %c19_61 = arith.constant 19 : index
    %51 = vector.load %arg9[%c0_60, %c19_61] : memref<8x686xf32, #tpu.memory_space<vmem>>, vector<8x648xf32>
    %c32_62 = arith.constant 32 : index
    %c0_63 = arith.constant 0 : index
    %52 = vector.load %arg8[%c32_62, %c0_63] : memref<72x648xf32, #tpu.memory_space<vmem>>, vector<8x648xf32>
    tpu.vector_store %arg8[%c32_62, %c0_63], %51 {strides = array<i32>} : memref<72x648xf32, #tpu.memory_space<vmem>>, vector<8x648xf32>,
    %c0_64 = arith.constant 0 : index
    %c20_65 = arith.constant 20 : index
    %53 = vector.load %arg9[%c0_64, %c20_65] : memref<8x686xf32, #tpu.memory_space<vmem>>, vector<8x648xf32>
    %c40_66 = arith.constant 40 : index
    %c0_67 = arith.constant 0 : index
    %54 = vector.load %arg8[%c40_66, %c0_67] : memref<72x648xf32, #tpu.memory_space<vmem>>, vector<8x648xf32>
    tpu.vector_store %arg8[%c40_66, %c0_67], %53 {strides = array<i32>} : memref<72x648xf32, #tpu.memory_space<vmem>>, vector<8x648xf32>,
    %c0_68 = arith.constant 0 : index
    %c36_69 = arith.constant 36 : index
    %55 = vector.load %arg9[%c0_68, %c36_69] : memref<8x686xf32, #tpu.memory_space<vmem>>, vector<8x648xf32>
    %c48_70 = arith.constant 48 : index
    %c0_71 = arith.constant 0 : index
    %56 = vector.load %arg8[%c48_70, %c0_71] : memref<72x648xf32, #tpu.memory_space<vmem>>, vector<8x648xf32>
    tpu.vector_store %arg8[%c48_70, %c0_71], %55 {strides = array<i32>} : memref<72x648xf32, #tpu.memory_space<vmem>>, vector<8x648xf32>,
    %c0_72 = arith.constant 0 : index
    %c37_73 = arith.constant 37 : index
    %57 = vector.load %arg9[%c0_72, %c37_73] : memref<8x686xf32, #tpu.memory_space<vmem>>, vector<8x648xf32>
    %c56_74 = arith.constant 56 : index
    %c0_75 = arith.constant 0 : index
    %58 = vector.load %arg8[%c56_74, %c0_75] : memref<72x648xf32, #tpu.memory_space<vmem>>, vector<8x648xf32>
    tpu.vector_store %arg8[%c56_74, %c0_75], %57 {strides = array<i32>} : memref<72x648xf32, #tpu.memory_space<vmem>>, vector<8x648xf32>,
    %c0_76 = arith.constant 0 : index
    %c38_77 = arith.constant 38 : index
    %59 = vector.load %arg9[%c0_76, %c38_77] : memref<8x686xf32, #tpu.memory_space<vmem>>, vector<8x648xf32>
    %c64_78 = arith.constant 64 : index
    %c0_79 = arith.constant 0 : index
    %60 = vector.load %arg8[%c64_78, %c0_79] : memref<72x648xf32, #tpu.memory_space<vmem>>, vector<8x648xf32>
    tpu.vector_store %arg8[%c64_78, %c0_79], %59 {strides = array<i32>} : memref<72x648xf32, #tpu.memory_space<vmem>>, vector<8x648xf32>,
    %c0_80 = arith.constant 0 : index
    %c0_81 = arith.constant 0 : index
    %61 = vector.load %arg4[%c0_80, %c0_81] : memref<8x72xf32, #tpu.memory_space<vmem>>, vector<8x72xf32>
    %c0_82 = arith.constant 0 : index
    %c0_83 = arith.constant 0 : index
    %62 = vector.load %arg8[%c0_82, %c0_83] : memref<72x648xf32, #tpu.memory_space<vmem>>, vector<72x648xf32>
    %cst_84 = arith.constant dense<0.000000e+00> : vector<8x648xf32>
    %63 = tpu.matmul %61, %62, %cst_84 {dimension_numbers = #tpu.dot_dimension_numbers<[1], [0], [0], [1], [0, 0, 1, 1], [], []>} : vector<8x72xf32>, vector<72x648xf32>, vector<8x648xf32> -> vector<8x648xf32>
    %c0_85 = arith.constant 0 : index
    %c0_86 = arith.constant 0 : index
    %c19_87 = arith.constant 19 : index
    %64 = vector.load %arg1[%c0_85, %c0_86, %c19_87] : memref<1x8x686xf32, #tpu.memory_space<vmem>>, vector<1x8x648xf32>
    %65 = vector.shape_cast %64 : vector<1x8x648xf32> to vector<8x648xf32>
    %c0_88 = arith.constant 0 : index
    %c0_89 = arith.constant 0 : index
    %66 = vector.load %arg5[%c0_88, %c0_89] : memref<8x1xf32, #tpu.memory_space<vmem>>, vector<8x1xf32>
    %67 = vector.broadcast %66 : vector<8x1xf32> to vector<8x648xf32>
    %68 = arith.addf %63, %67 : vector<8x648xf32>
    %69 = arith.addf %68, %65 : vector<8x648xf32>
    %cst_90 = arith.constant 0.000000e+00 : f32
    %70 = vector.broadcast %cst_90 : f32 to vector<8x648xf32>
    %71 = arith.maximumf %69, %70 : vector<8x648xf32>
    %c0_91 = arith.constant 0 : index
    %c0_92 = arith.constant 0 : index
    %c0_93 = arith.constant 0 : index
    %72 = vector.load %arg7[%c0_91, %c0_92, %c0_93] : memref<1x8x648xf32, #tpu.memory_space<vmem>>, vector<1x8x648xf32>
    %73 = vector.shape_cast %72 : vector<1x8x648xf32> to vector<8x648xf32>
    %74 = vector.shape_cast %71 : vector<8x648xf32> to vector<1x8x648xf32>
    tpu.vector_store %arg7[%c0_91, %c0_92, %c0_93], %74 {strides = array<i32>} : memref<1x8x648xf32, #tpu.memory_space<vmem>>, vector<1x8x648xf32>,
    return
  }
  func.func @transform_0(%arg0: i32) -> (i32, i32, i32) {
    %c0_i32 = arith.constant 0 : i32
    %c0_i32_0 = arith.constant 0 : i32
    %c0_i32_1 = arith.constant 0 : i32
    return %arg0, %c0_i32, %c0_i32_0 : i32, i32, i32
  }
  func.func @transform_1(%arg0: i32) -> (i32, i32) {
    %c0_i32 = arith.constant 0 : i32
    %c0_i32_0 = arith.constant 0 : i32
    %c0_i32_1 = arith.constant 0 : i32
    return %c0_i32, %c0_i32_0 : i32, i32
  }
  func.func @transform_2(%arg0: i32) -> (i32, i32) {
    %c0_i32 = arith.constant 0 : i32
    %c0_i32_0 = arith.constant 0 : i32
    %c0_i32_1 = arith.constant 0 : i32
    return %c0_i32, %c0_i32_0 : i32, i32
  }
  func.func @transform_3(%arg0: i32) -> (i32, i32) {
    %c0_i32 = arith.constant 0 : i32
    %c0_i32_0 = arith.constant 0 : i32
    %c0_i32_1 = arith.constant 0 : i32
    return %c0_i32, %c0_i32_0 : i32, i32
  }
  func.func @transform_4(%arg0: i32) -> (i32, i32) {
    %c0_i32 = arith.constant 0 : i32
    %c0_i32_0 = arith.constant 0 : i32
    %c0_i32_1 = arith.constant 0 : i32
    return %c0_i32, %c0_i32_0 : i32, i32
  }
  func.func @transform_5(%arg0: i32) -> (i32, i32) {
    %c0_i32 = arith.constant 0 : i32
    %c0_i32_0 = arith.constant 0 : i32
    %c0_i32_1 = arith.constant 0 : i32
    return %c0_i32, %c0_i32_0 : i32, i32
  }
  func.func @transform_6(%arg0: i32) -> (i32, i32, i32) {
    %c0_i32 = arith.constant 0 : i32
    %c0_i32_0 = arith.constant 0 : i32
    %c0_i32_1 = arith.constant 0 : i32
    return %arg0, %c0_i32, %c0_i32_0 : i32, i32, i32
  }
}

</mosaic_0001>

<bundles_post_ra>
// kernel: basic_block_pallas.1
= control target key start
LH: loop header
LB: loop body
LE: loop exit
PB: predicated region body
PF: predicated region fallthrough
CT: control target
= control target key end

     0   :  { %s1523_s25 = smov 127   ;;  %s1524_s8 = smov 126   ;;  %v1530_v5 = vmov 0.0   ;;  %vm34_vm0 = vcmask 64512   ;;  %v1532_v7 = vmov 0   ;;  %vm60_vm1 = vcmask 1039360   ;;  %s2016_s0 = inlined_call_operand.vmem [shape: f32[1,8,686], index: 0, kind: input, shape index: {}]   ;;  %s2017_s2 = inlined_call_operand.vmem [shape: f32[8,1], index: 2, kind: input, shape index: {}]   ;;  %s2018_s1 = inlined_call_operand.vmem [shape: f32[8,72], index: 1, kind: input, shape index: {}]   ;;  %s2019_s5 = inlined_call_operand.vmem [shape: f32[1,648], index: 5, kind: input, shape index: {}]   ;;  %s2020_s4 = inlined_call_operand.vmem [shape: f32[8,1], index: 4, kind: input, shape index: {}]   ;;  %s2021_s3 = inlined_call_operand.vmem [shape: f32[8,72], index: 3, kind: input, shape index: {}]   ;;  %s2022_s6 = inlined_call_operand.vmem [shape: f32[1,8,648], index: 6, kind: output, shape index: {}]  }
   0x1   :  { %v1572_v0 = vld [vmem:[%s2016_s0 + $0x8] sm:$0xff]  ;;  %v1577_v1 = vld [vmem:[%s2016_s0] sm:$0xff]  ;;  %v1586_v2 = vld [vmem:[%s2016_s0 + $0x10] sm:$0xff]  ;;  %s1525_s9 = smov 110   ;;  %s1526_s10 = smov 109   ;;  %501 = vmatprep.mubr.f32.mxu0 %v1530_v5  ;;  %572 = vmatprep.mubr.f32.mxu1 %v1530_v5  ;;  %vm102_vm2 = vcmask 1031168  }
   0x2   :  { %50 = vrot.lane.b32.xlu0 %v1572_v0, %s1523_s25  ;;  %48 = vrot.lane.b32.xlu1 %v1577_v1, %s1523_s25  ;;  %v1591_v3 = vld [vmem:[%s2016_s0 + $0x18] sm:$0xff]  ;;  %v1600_v4 = vld [vmem:[%s2016_s0 + $0x20] sm:$0xff]  ;;  %s1527_s11 = smov 108   ;;  %s1528_s12 = smov 92   ;;  %vm144_vm3 = vcmask 900096   ;;  %vm186_vm4 = vcmask 891904  }
   0x3   :  { %s1529_s13 = smov 91   ;;  %v41_v6 = vld [vmem:[%s2016_s0 + $0x28] sm:$0xff]  ;;  %s1531_s16 = smov 90   ;;  %1522 = vset.pattern.permute.xlu0 %v1532_v7  ;;  %v427_v8 = vld [vmem:[%s2017_s2] sm:$0xff]  ;;  %vm228_vm5 = vcmask 883712   ;;  %vm270_vm6 = vcmask 752640  }
   0x4   :  { %35 = vst.msk [vmem:[#allocation2 + $0x28] sm:$0xff] %vm34_vm0, %v41_v6  ;;  %vm312_vm7 = vcmask 744448   ;;  %vm354_vm8 = vcmask 736256   ;;  %vm433_vm9 = vcmask 588800   ;;  %vm694_vm10 = vcmask 154624   ;;  %s1533_s21 = smov 19  }
   0x5   :  { %695 = vst.msk [vmem:[#allocation3] sm:$0xff] %vm694_vm10, %v1530_v5  ;;  %vm696_vm11 = vcmask 376024   ;;  %vm727_vm12 = vcmask 1047704   ;;  %vm733_vm13 = vcmask 220160  }
   0x6   :  { %52 = vrot.lane.b32.xlu0 %v1586_v2, %s1523_s25  ;;  %54 = vrot.lane.b32.xlu1 %v1591_v3, %s1523_s25  ;;  %697 = vst.msk [vmem:[#allocation3 + $0x28] sm:$0xff] %vm696_vm11, %v1530_v5 }
   0xa   :  { %56 = vrot.lane.b32.xlu0 %v1600_v4, %s1523_s25  ;;  %92 = vrot.lane.b32.xlu1 %v1572_v0, %s1524_s8 }
   0xe   :  { %94 = vrot.lane.b32.xlu0 %v1586_v2, %s1524_s8  ;;  %134 = vrot.lane.b32.xlu1 %v1572_v0, %s1525_s9 }
  0x12   :  { %136 = vrot.lane.b32.xlu0 %v1586_v2, %s1525_s9  ;;  %90 = vrot.lane.b32.xlu1 %v1577_v1, %s1524_s8 }
  0x16   :  { %96 = vrot.lane.b32.xlu0 %v1591_v3, %s1524_s8  ;;  %98 = vrot.lane.b32.xlu1 %v1600_v4, %s1524_s8 }
  0x1a   :  { %132 = vrot.lane.b32.xlu0 %v1577_v1, %s1525_s9  ;;  %138 = vrot.lane.b32.xlu1 %v1591_v3, %s1525_s9 }
  0x1e   :  { %140 = vrot.lane.b32.xlu0 %v1600_v4, %s1525_s9  ;;  %176 = vrot.lane.b32.xlu1 %v1572_v0, %s1526_s10 }
  0x22   :  { %178 = vrot.lane.b32.xlu0 %v1586_v2, %s1526_s10  ;;  %218 = vrot.lane.b32.xlu1 %v1572_v0, %s1527_s11 }
  0x26   :  { %220 = vrot.lane.b32.xlu0 %v1586_v2, %s1527_s11  ;;  %174 = vrot.lane.b32.xlu1 %v1577_v1, %s1526_s10 }
  0x2a   :  { %180 = vrot.lane.b32.xlu0 %v1591_v3, %s1526_s10  ;;  %182 = vrot.lane.b32.xlu1 %v1600_v4, %s1526_s10 }
  0x2e   :  { %216 = vrot.lane.b32.xlu0 %v1577_v1, %s1527_s11  ;;  %222 = vrot.lane.b32.xlu1 %v1591_v3, %s1527_s11 }
  0x32   :  { %224 = vrot.lane.b32.xlu0 %v1600_v4, %s1527_s11  ;;  %260 = vrot.lane.b32.xlu1 %v1572_v0, %s1528_s12 }
  0x36   :  { %262 = vrot.lane.b32.xlu0 %v1586_v2, %s1528_s12  ;;  %302 = vrot.lane.b32.xlu1 %v1572_v0, %s1529_s13 }
  0x3a   :  { %304 = vrot.lane.b32.xlu0 %v1586_v2, %s1529_s13  ;;  %258 = vrot.lane.b32.xlu1 %v1577_v1, %s1528_s12 }
  0x3e   :  { %264 = vrot.lane.b32.xlu0 %v1591_v3, %s1528_s12  ;;  %266 = vrot.lane.b32.xlu1 %v1600_v4, %s1528_s12 }
  0x42   :  { %300 = vrot.lane.b32.xlu0 %v1577_v1, %s1529_s13  ;;  %306 = vrot.lane.b32.xlu1 %v1591_v3, %s1529_s13 }
  0x46   :  { %308 = vrot.lane.b32.xlu0 %v1600_v4, %s1529_s13  ;;  %344 = vrot.lane.b32.xlu1 %v1572_v0, %s1531_s16 }
  0x4a   :  { %346 = vrot.lane.b32.xlu0 %v1586_v2, %s1531_s16  ;;  %342 = vrot.lane.b32.xlu1 %v1577_v1, %s1531_s16 }
  0x4e   :  { %348 = vrot.lane.b32.xlu0 %v1591_v3, %s1531_s16  ;;  %350 = vrot.lane.b32.xlu1 %v1600_v4, %s1531_s16 }
  0x52   :  { %58 = vrot.lane.b32.xlu0 %v41_v6, %s1523_s25  ;;  %100 = vrot.lane.b32.xlu1 %v41_v6, %s1524_s8 }
  0x56   :  { %142 = vrot.lane.b32.xlu0 %v41_v6, %s1525_s9  ;;  %184 = vrot.lane.b32.xlu1 %v41_v6, %s1526_s10 }
  0x5a   :  { %226 = vrot.lane.b32.xlu0 %v41_v6, %s1527_s11  ;;  %268 = vrot.lane.b32.xlu1 %v41_v6, %s1528_s12 }
  0x5e   :  { %310 = vrot.lane.b32.xlu0 %v41_v6, %s1529_s13  ;;  %352 = vrot.lane.b32.xlu1 %v41_v6, %s1531_s16 }
  0x62   :  { %430 = vperm.xlu0 %1522, %v427_v8  }
  0x74   :  { %v51_v9 = vpop.permute.xlu0 %50  ;;  %v49_v10 = vpop.permute.xlu1 %48 }
  0x75   :  { %v61_v11 = vsel %vm60_vm1, %v49_v10, %v51_v9 }
  0x76   :  { %v1417_v16 = vpack.c.bf16 %v61_v11, %v1577_v1 }
  0x78   :  { %v53_v12 = vpop.permute.xlu0 %52  ;;  %v55_v13 = vpop.permute.xlu1 %54 }
  0x79   :  { %v62_v14 = vsel %vm60_vm1, %v51_v9, %v53_v12  ;;  %v63_v17 = vsel %vm60_vm1, %v53_v12, %v55_v13 }
  0x7a   :  { %v1415_v15 = vpack.c.bf16 %v62_v14, %v1572_v0  ;;  %v1433_v22 = vpack.c.bf16 %v63_v17, %v1586_v2 }
  0x7c   :  { %v1696_v18 = vpop.permute.xlu0 %56  ;;  %v93_v19 = vpop.permute.xlu1 %92  ;;  %1416 = vmatprep.subr.bf16.mxu0 %v1415_v15 }
  0x7d   :  { %v64_v20 = vsel %vm60_vm1, %v55_v13, %v1696_v18  ;;  %1418 = vmatpush1.bf16.msra.mxu0 %v1417_v16 }
  0x7e   :  { %v1431_v21 = vpack.c.bf16 %v64_v20, %v1591_v3 }
  0x80   :  { %v95_v23 = vpop.permute.xlu0 %94  ;;  %v135_v24 = vpop.permute.xlu1 %134  ;;  %1432 = vmatprep.subr.bf16.mxu1 %v1431_v21 }
  0x81   :  { %1434 = vmatpush1.bf16.msra.mxu1 %v1433_v22  ;;  %v104_v27 = vsel %vm102_vm2, %v93_v19, %v95_v23 }
  0x84   :  { %v137_v25 = vpop.permute.xlu0 %136  ;;  %v91_v26 = vpop.permute.xlu1 %90 }
  0x85   :  { %v146_v28 = vsel %vm144_vm3, %v135_v24, %v137_v25  ;;  %v103_v34 = vsel %vm102_vm2, %v91_v26, %v93_v19 }
  0x86   :  { %v1419_v29 = vpack.c.bf16 %v146_v28, %v104_v27 }
  0x88   :  { %v97_v30 = vpop.permute.xlu0 %96  ;;  %v1704_v31 = vpop.permute.xlu1 %98  ;;  %1420 = vmatprep.subr.bf16.mxu0 %v1419_v29 }
  0x89   :  { %v106_v40 = vsel %vm102_vm2, %v97_v30, %v1704_v31  ;;  %v105_v42 = vsel %vm102_vm2, %v95_v23, %v97_v30 }
  0x8c   :  { %v133_v32 = vpop.permute.xlu0 %132  ;;  %v139_v33 = vpop.permute.xlu1 %138 }
  0x8d   :  { %v145_v35 = vsel %vm144_vm3, %v133_v32, %v135_v24  ;;  %v147_v37 = vsel %vm144_vm3, %v137_v25, %v139_v33 }
  0x8e   :  { %v1421_v36 = vpack.c.bf16 %v145_v35, %v103_v34  ;;  %v1437_v44 = vpack.c.bf16 %v147_v37, %v105_v42 }
  0x90   :  { %v1709_v38 = vpop.permute.xlu0 %140  ;;  %v177_v39 = vpop.permute.xlu1 %176  ;;  %1422 = vmatpush1.bf16.msra.mxu0 %v1421_v36 }
  0x91   :  { %v148_v41 = vsel %vm144_vm3, %v139_v33, %v1709_v38  ;;  %v1749_v33 = vld [vmem:[%s2018_s1] sm:$0xff] }
  0x92   :  { %v1435_v43 = vpack.c.bf16 %v148_v41, %v106_v40 }
  0x94   :  { %v179_v45 = vpop.permute.xlu0 %178  ;;  %v219_v46 = vpop.permute.xlu1 %218  ;;  %1436 = vmatprep.subr.bf16.mxu1 %v1435_v43  ;;  %v378_v43 = vld [vmem:[#allocation2 + $0x28] sm:$0xff] }
  0x95   :  { %1438 = vmatpush1.bf16.msra.mxu1 %v1437_v44  ;;  %v188_v49 = vsel %vm186_vm4, %v177_v39, %v179_v45 }
  0x98   :  { %v221_v47 = vpop.permute.xlu0 %220  ;;  %v175_v48 = vpop.permute.xlu1 %174 }
  0x99   :  { %v230_v50 = vsel %vm228_vm5, %v219_v46, %v221_v47  ;;  %v187_v56 = vsel %vm186_vm4, %v175_v48, %v177_v39 }
  0x9a   :  { %v1423_v51 = vpack.c.bf16 %v230_v50, %v188_v49 }
  0x9c   :  { %v181_v52 = vpop.permute.xlu0 %180  ;;  %v1718_v53 = vpop.permute.xlu1 %182  ;;  %1424 = vmatprep.subr.bf16.mxu0 %v1423_v51 }
  0x9d   :  { %v190_v62 = vsel %vm186_vm4, %v181_v52, %v1718_v53  ;;  %v189_v0 = vsel %vm186_vm4, %v179_v45, %v181_v52 }
  0xa0   :  { %v217_v54 = vpop.permute.xlu0 %216  ;;  %v223_v55 = vpop.permute.xlu1 %222 }
  0xa1   :  { %v229_v57 = vsel %vm228_vm5, %v217_v54, %v219_v46  ;;  %v231_v59 = vsel %vm228_vm5, %v221_v47, %v223_v55 }
  0xa2   :  { %v1425_v58 = vpack.c.bf16 %v229_v57, %v187_v56  ;;  %v1441_v2 = vpack.c.bf16 %v231_v59, %v189_v0 }
  0xa4   :  { %v1723_v60 = vpop.permute.xlu0 %224  ;;  %v261_v61 = vpop.permute.xlu1 %260  ;;  %1426 = vmatpush1.bf16.msra.mxu0 %v1425_v58 }
  0xa5   :  { %v232_v63 = vsel %vm228_vm5, %v223_v55, %v1723_v60 }
  0xa6   :  { %v1439_v1 = vpack.c.bf16 %v232_v63, %v190_v62 }
  0xa8   :  { %v263_v3 = vpop.permute.xlu0 %262  ;;  %v303_v6 = vpop.permute.xlu1 %302  ;;  %1440 = vmatprep.subr.bf16.mxu1 %v1439_v1 }
  0xa9   :  { %1442 = vmatpush1.bf16.msra.mxu1 %v1441_v2  ;;  %v272_v9 = vsel %vm270_vm6, %v261_v61, %v263_v3 }
  0xac   :  { %v305_v7 = vpop.permute.xlu0 %304  ;;  %v259_v8 = vpop.permute.xlu1 %258 }
  0xad   :  { %v314_v10 = vsel %vm312_vm7, %v303_v6, %v305_v7  ;;  %v271_v16 = vsel %vm270_vm6, %v259_v8, %v261_v61 }
  0xae   :  { %v1427_v11 = vpack.c.bf16 %v314_v10, %v272_v9  ;;  %v656_v10 = vld [vmem:[%s2019_s5] sm:$0x3f] }
  0xb0   :  { %v265_v12 = vpop.permute.xlu0 %264  ;;  %v1732_v13 = vpop.permute.xlu1 %266  ;;  %1428 = vmatprep.subr.bf16.mxu0 %v1427_v11 }
  0xb1   :  { %v274_v23 = vsel %vm270_vm6, %v265_v12, %v1732_v13  ;;  %v273_v25 = vsel %vm270_vm6, %v263_v3, %v265_v12 }
  0xb4   :  { %v301_v14 = vpop.permute.xlu0 %300  ;;  %v307_v15 = vpop.permute.xlu1 %306 }
  0xb5   :  { %v313_v17 = vsel %vm312_vm7, %v301_v14, %v303_v6  ;;  %v315_v20 = vsel %vm312_vm7, %v305_v7, %v307_v15  ;;  %v658_v6 = vlaneseq }
  0xb6   :  { %v1429_v19 = vpack.c.bf16 %v313_v17, %v271_v16  ;;  %v1445_v27 = vpack.c.bf16 %v315_v20, %v273_v25 }
  0xb7   :  { %v659_v7 = vshrl.u32 %v658_v6, 7 }
  0xb8   :  { %v1737_v21 = vpop.permute.xlu0 %308  ;;  %v345_v22 = vpop.permute.xlu1 %344  ;;  %1430 = vmatpush1.bf16.msra.mxu0 %v1429_v19 }
  0xb9   :  { %v316_v24 = vsel %vm312_vm7, %v307_v15, %v1737_v21  ;;  %v660_v8 = vsub.s32 0, %v659_v7  ;;  %v664_v12 = vsub.s32 1, %v659_v7  ;;  %v668_v16 = vsub.s32 2, %v659_v7 }
  0xba   :  { %v1443_v26 = vpack.c.bf16 %v316_v24, %v274_v23 }
  0xbb   :  { %v661_v14 = vrot.slane %v656_v10, %v660_v8  ;;  %v665_v20 = vrot.slane %v656_v10, %v664_v12 }
  0xbc   :  { %v347_v28 = vpop.permute.xlu0 %346  ;;  %v343_v29 = vpop.permute.xlu1 %342  ;;  %1444 = vmatprep.subr.bf16.mxu1 %v1443_v26  ;;  %v669_v26 = vrot.slane %v656_v10, %v668_v16 }
  0xbd   :  { %v356_v30 = vsel %vm354_vm8, %v345_v22, %v347_v28  ;;  %v355_v32 = vsel %vm354_vm8, %v343_v29, %v345_v22  ;;  %1446 = vmatpush1.bf16.msra.mxu1 %v1445_v27  ;;  %v672_v22 = vsub.s32 3, %v659_v7 }
  0xbe   :  { %453 = vmatprep.subr.mxu0 %v356_v30 }
  0xbf   :  { %454 = vmatpush1.msra.mxu0 %v355_v32 }
  0xc0   :  { %v349_v34 = vpop.permute.xlu0 %348  ;;  %v351_v35 = vpop.permute.xlu1 %350  ;;  %1409 = vmatmul.mubr.msk.f32.vlgmr.msra.gmra.mrb[0].mxu0 %vm433_vm9, %v1749_v33 }
  0xc1   :  { %v357_v36 = vsel %vm354_vm8, %v347_v28, %v349_v34  ;;  %v358_v37 = vsel %vm354_vm8, %v349_v34, %v351_v35  ;;  %643 = vmatprep.mubr.f32.mxu0 %v1530_v5  ;;  %v673_v34 = vrot.slane %v656_v10, %v672_v22 }
  0xc2   :  { %524 = vmatprep.subr.mxu1 %v358_v37  ;;  %v680_v37 = vsub.s32 5, %v659_v7 }
  0xc3   :  { %525 = vmatpush1.msra.mxu1 %v357_v36  ;;  %v676_v36 = vsub.s32 4, %v659_v7 }
  0xc4   :  { %v59_v39 = vpop.permute.xlu0 %58  ;;  %v101_v40 = vpop.permute.xlu1 %100  ;;  %1410 = vmatmul.mubr.msk.f32.vlgmr.msra.gmra.mrb[0].mxu1 %vm433_vm9, %v1749_v33 }
  0xc5   :  { %77 = vst.msk [vmem:[#allocation2 + $0x58] sm:$0xff] %vm34_vm0, %v59_v39  ;;  %119 = vst.msk [vmem:[#allocation2 + $0x88] sm:$0xff] %vm34_vm0, %v101_v40  ;;  %1209 = vmatprep.mubr.f32.mxu1 %v1530_v5  ;;  %v65_v44 = vsel %vm60_vm1, %v1696_v18, %v59_v39  ;;  %v107_v18 = vsel %vm102_vm2, %v1704_v31, %v101_v40 }
  0xc6   :  { %v1449_v49 = vpack.c.bf16 %v65_v44, %v1600_v4  ;;  %v681_v44 = vrot.slane %v656_v10, %v680_v37 }
  0xc8   :  { %v143_v41 = vpop.permute.xlu0 %142  ;;  %v185_v42 = vpop.permute.xlu1 %184 }
  0xc9   :  { %161 = vst.msk [vmem:[#allocation2 + $0xb8] sm:$0xff] %vm34_vm0, %v143_v41  ;;  %203 = vst.msk [vmem:[#allocation2 + $0xe8] sm:$0xff] %vm34_vm0, %v185_v42  ;;  %v149_v51 = vsel %vm144_vm3, %v1709_v38, %v143_v41  ;;  %v191_v59 = vsel %vm186_vm4, %v1718_v53, %v185_v42  ;;  %v677_v41 = vrot.slane %v656_v10, %v676_v36 }
  0xca   :  { %v1453_v57 = vpack.c.bf16 %v149_v51, %v107_v18 }
  0xcc   :  { %v227_v45 = vpop.permute.xlu0 %226  ;;  %v269_v46 = vpop.permute.xlu1 %268  ;;  %v384_v47 = vld [vmem:[#allocation2 + $0x58] sm:$0xff]  ;;  %v390_v50 = vld [vmem:[#allocation2 + $0x88] sm:$0xff] }
  0xcd   :  { %245 = vst.msk [vmem:[#allocation2 + $0x118] sm:$0xff] %vm34_vm0, %v227_v45  ;;  %287 = vst.msk [vmem:[#allocation2 + $0x148] sm:$0xff] %vm34_vm0, %v269_v46  ;;  %v1447_v48 = vpack.c.bf16 %v384_v47, %v378_v43  ;;  %v233_v4 = vsel %vm228_vm5, %v1723_v60, %v227_v45  ;;  %v275_v1 = vsel %vm270_vm6, %v1732_v13, %v269_v46 }
  0xce   :  { %v1457_v62 = vpack.c.bf16 %v233_v4, %v191_v59 }
  0xcf   :  { %1448 = vmatprep.subr.bf16.mxu0 %v1447_v48 }
  0xd0   :  { %v311_v52 = vpop.permute.xlu0 %310  ;;  %v353_v54 = vpop.permute.xlu1 %352  ;;  %1450 = vmatpush1.bf16.msra.mxu0 %v1449_v49  ;;  %v396_v55 = vld [vmem:[#allocation2 + $0xb8] sm:$0xff]  ;;  %v402_v58 = vld [vmem:[#allocation2 + $0xe8] sm:$0xff] }
  0xd1   :  { %329 = vst.msk [vmem:[#allocation2 + $0x178] sm:$0xff] %vm34_vm0, %v311_v52  ;;  %371 = vst.msk [vmem:[#allocation2 + $0x1a8] sm:$0xff] %vm34_vm0, %v353_v54  ;;  %v1451_v56 = vpack.c.bf16 %v396_v55, %v390_v50  ;;  %v317_v31 = vsel %vm312_vm7, %v1737_v21, %v311_v52  ;;  %v359_v53 = vsel %vm354_vm8, %v351_v35, %v353_v54 }
  0xd2   :  { %v1461_v60 = vpack.c.bf16 %v317_v31, %v275_v1  ;;  %v1132_v31 = vld [vmem:[%s2016_s0 + $0x10] sm:$0xff]  ;;  %v1134_v1 = vld [vmem:[%s2016_s0 + $0x20] sm:$0xff] }
  0xd3   :  { %1452 = vmatprep.subr.bf16.mxu0 %v1451_v56 }
  0xd4   :  { %1454 = vmatpush1.bf16.msra.mxu0 %v1453_v57  ;;  %v408_v38 = vld [vmem:[#allocation2 + $0x118] sm:$0xff]  ;;  %v414_v63 = vld [vmem:[#allocation2 + $0x148] sm:$0xff] }
  0xd5   :  { %v1455_v61 = vpack.c.bf16 %v408_v38, %v402_v58 }
  0xd7   :  { %1456 = vmatprep.subr.bf16.mxu0 %v1455_v61  ;;  %v1136_v61 = vld [vmem:[%s2020_s4] sm:$0xff] }
  0xd8   :  { %1458 = vmatpush1.bf16.msra.mxu0 %v1457_v62  ;;  %v420_v0 = vld [vmem:[#allocation2 + $0x178] sm:$0xff]  ;;  %v426_v3 = vld [vmem:[#allocation2 + $0x1a8] sm:$0xff]  ;;  %v1130_v62 = vld [vmem:[%s2016_s0] sm:$0xff] }
  0xd9   :  { %v1459_v2 = vpack.c.bf16 %v420_v0, %v414_v63  ;;  %v1131_v63 = vld [vmem:[%s2016_s0 + $0x8] sm:$0xff]  ;;  %v1133_v0 = vld [vmem:[%s2016_s0 + $0x18] sm:$0xff] }
  0xdb   :  { %1460 = vmatprep.subr.bf16.mxu0 %v1459_v2  ;;  %v1135_v2 = vld [vmem:[%s2016_s0 + $0x28] sm:$0xff] }
  0xdc   :  { %1462 = vmatpush1.bf16.msra.mxu0 %v1461_v60 }
  0xdd   :  { %595 = vmatprep.subr.mxu0 %v426_v3 }
  0xe0   :  { %596 = vmatpush1.msra.mxu0 %v359_v53 }
  0xe1   :  { %1411 = vmatmul.mubr.msk.f32.vlgmr.msra.gmra.mrb[2].mxu0 %vm433_vm9, %v1749_v33  ;;  %v431_v9 = vpop.permute.xlu0 %430 }
  0xe2   :  { %1280 = vmatprep.mubr.f32.mxu0 %v1530_v5 }
 0x193   :  { %v503_v11 = vpop.f32.mrb[0].mxu0 }
 0x194   :  { %v504_v13 = vadd.f32 %v503_v11, %v431_v9  ;;  %v505_v15 = vpop.f32.mrb[1].mxu0 }
 0x195   :  { %v506_v17 = vadd.f32 %v505_v15, %v431_v9 }
 0x196   :  { %v650_v19 = vmax.f32 %v504_v13, 0.0 }
 0x197   :  { %v574_v21 = vpop.f32.mrb[0].mxu1  ;;  %v651_v24 = vmax.f32 %v506_v17, 0.0 }
 0x198   :  { %v688_v23 = vmul.f32 %v661_v14, %v650_v19  ;;  %v575_v25 = vadd.f32 %v574_v21, %v431_v9  ;;  %v576_v27 = vpop.f32.mrb[1].mxu1 }
 0x199   :  { %v577_v28 = vadd.f32 %v576_v27, %v431_v9  ;;  %v689_v30 = vmul.f32 %v665_v20, %v651_v24 }
 0x19a   :  { %v652_v29 = vmax.f32 %v575_v25, 0.0  ;;  %704 = vrot.lane.b32.xlu1 %v688_v23, %s1533_s21 }
 0x19b   :  { %v653_v33 = vmax.f32 %v577_v28, 0.0 }
 0x19c   :  { %v690_v32 = vmul.f32 %v669_v26, %v652_v29 }
 0x19d   :  { %v691_v35 = vmul.f32 %v673_v34, %v653_v33 }
 0x19e   :  { %708 = vrot.lane.b32.xlu0 %v690_v32, %s1533_s21  ;;  %706 = vrot.lane.b32.xlu1 %v689_v30, %s1533_s21 }
 0x1a2   :  { %710 = vrot.lane.b32.xlu1 %v691_v35, %s1533_s21 }
 0x1b4   :  { %v645_v39 = vpop.f32.mrb[2].mxu0 }
 0x1b5   :  { %v646_v40 = vadd.f32 %v645_v39, %v431_v9  ;;  %v647_v42 = vpop.f32.mrb[3].mxu0 }
 0x1b6   :  { %v648_v43 = vadd.f32 %v647_v42, %v431_v9 }
 0x1b7   :  { %v654_v45 = vmax.f32 %v646_v40, 0.0 }
 0x1b8   :  { %v655_v46 = vmax.f32 %v648_v43, 0.0 }
 0x1b9   :  { %v692_v47 = vmul.f32 %v677_v41, %v654_v45 }
 0x1ba   :  { %v693_v48 = vmul.f32 %v681_v44, %v655_v46 }
 0x1bb   :  { %712 = vrot.lane.b32.xlu0 %v692_v47, %s1533_s21 }
 0x1bc   :  { %714 = vrot.lane.b32.xlu1 %v693_v48, %s1533_s21 }
 0x20c   :  { %v705_v49 = vpop.permute.xlu1 %704 }
 0x20d   :  { %728 = vst.msk [vmem:[#allocation3] sm:$0xff] %vm727_vm12, %v705_v49 }
 0x210   :  { %v709_v50 = vpop.permute.xlu0 %708  ;;  %v707_v51 = vpop.permute.xlu1 %706 }
 0x211   :  { %v1793_v52 = vsel %vm694_vm10, %v705_v49, %v707_v51  ;;  %v1796_v54 = vsel %vm694_vm10, %v707_v51, %v709_v50 }
 0x214   :  { %v1798_v55 = vld [vmem:[#allocation3] sm:$0xff]  ;;  %v711_v18 = vpop.permute.xlu1 %710 }
 0x215   :  { %v1801_v56 = vsel %vm694_vm10, %v709_v50, %v711_v18  ;;  %800 = vrot.lane.b32.xlu1 %v1798_v55, %s1524_s8  ;;  %759 = vrot.lane.b32.xlu0 %v1798_v55, %s1523_s25 }
 0x219   :  { %882 = vrot.lane.b32.xlu1 %v1798_v55, %s1526_s10  ;;  %841 = vrot.lane.b32.xlu0 %v1798_v55, %s1525_s9 }
 0x21d   :  { %964 = vrot.lane.b32.xlu1 %v1798_v55, %s1528_s12  ;;  %923 = vrot.lane.b32.xlu0 %v1798_v55, %s1527_s11 }
 0x221   :  { %1005 = vrot.lane.b32.xlu0 %v1798_v55, %s1529_s13  ;;  %763 = vrot.lane.b32.xlu1 %v1796_v54, %s1523_s25 }
 0x225   :  { %1046 = vrot.lane.b32.xlu0 %v1798_v55, %s1531_s16  ;;  %802 = vrot.lane.b32.xlu1 %v1793_v52, %s1524_s8 }
 0x229   :  { %843 = vrot.lane.b32.xlu1 %v1793_v52, %s1525_s9  ;;  %761 = vrot.lane.b32.xlu0 %v1793_v52, %s1523_s25 }
 0x22d   :  { %v713_v57 = vpop.permute.xlu0 %712  ;;  %884 = vrot.lane.b32.xlu1 %v1793_v52, %s1526_s10  ;;  %804 = vrot.lane.b32.xlu0 %v1796_v54, %s1524_s8 }
 0x22e   :  { %v1832_v58 = vsel %vm694_vm10, %v711_v18, %v713_v57  ;;  %v715_v4 = vpop.permute.xlu1 %714 }
 0x22f   :  { %v720_v38 = vsel %vm694_vm10, %v713_v57, %v715_v4 }
 0x230   :  { %734 = vst.msk [vmem:[#allocation3 + $0x28] sm:$0xff] %vm733_vm13, %v720_v38 }
 0x231   :  { %925 = vrot.lane.b32.xlu1 %v1793_v52, %s1527_s11  ;;  %845 = vrot.lane.b32.xlu0 %v1796_v54, %s1525_s9 }
 0x235   :  { %966 = vrot.lane.b32.xlu1 %v1793_v52, %s1528_s12  ;;  %886 = vrot.lane.b32.xlu0 %v1796_v54, %s1526_s10 }
 0x237   :  { %v740_v59 = vld [vmem:[#allocation3 + $0x28] sm:$0xff] }
 0x238   :  { %746 = vst.msk [vmem:[#allocation2 + $0x28] sm:$0xff] %vm34_vm0, %v740_v59 }
 0x239   :  { %1007 = vrot.lane.b32.xlu1 %v1793_v52, %s1529_s13  ;;  %927 = vrot.lane.b32.xlu0 %v1796_v54, %s1527_s11 }
 0x23d   :  { %968 = vrot.lane.b32.xlu0 %v1796_v54, %s1528_s12  ;;  %765 = vrot.lane.b32.xlu1 %v1801_v56, %s1523_s25 }
 0x241   :  { %1009 = vrot.lane.b32.xlu0 %v1796_v54, %s1529_s13  ;;  %1048 = vrot.lane.b32.xlu1 %v1793_v52, %s1531_s16 }
 0x245   :  { %1050 = vrot.lane.b32.xlu0 %v1796_v54, %s1531_s16  ;;  %806 = vrot.lane.b32.xlu1 %v1801_v56, %s1524_s8 }
 0x249   :  { %767 = vrot.lane.b32.xlu0 %v1832_v58, %s1523_s25  ;;  %847 = vrot.lane.b32.xlu1 %v1801_v56, %s1525_s9 }
 0x24d   :  { %808 = vrot.lane.b32.xlu0 %v1832_v58, %s1524_s8  ;;  %888 = vrot.lane.b32.xlu1 %v1801_v56, %s1526_s10 }
 0x251   :  { %849 = vrot.lane.b32.xlu0 %v1832_v58, %s1525_s9  ;;  %929 = vrot.lane.b32.xlu1 %v1801_v56, %s1527_s11 }
 0x255   :  { %890 = vrot.lane.b32.xlu0 %v1832_v58, %s1526_s10  ;;  %970 = vrot.lane.b32.xlu1 %v1801_v56, %s1528_s12 }
 0x259   :  { %931 = vrot.lane.b32.xlu0 %v1832_v58, %s1527_s11  ;;  %1011 = vrot.lane.b32.xlu1 %v1801_v56, %s1529_s13 }
 0x25d   :  { %972 = vrot.lane.b32.xlu0 %v1832_v58, %s1528_s12  ;;  %769 = vrot.lane.b32.xlu1 %v740_v59, %s1523_s25 }
 0x261   :  { %1013 = vrot.lane.b32.xlu0 %v1832_v58, %s1529_s13  ;;  %810 = vrot.lane.b32.xlu1 %v740_v59, %s1524_s8 }
 0x265   :  { %851 = vrot.lane.b32.xlu0 %v740_v59, %s1525_s9  ;;  %892 = vrot.lane.b32.xlu1 %v740_v59, %s1526_s10 }
 0x269   :  { %933 = vrot.lane.b32.xlu0 %v740_v59, %s1527_s11  ;;  %974 = vrot.lane.b32.xlu1 %v740_v59, %s1528_s12 }
 0x26d   :  { %1015 = vrot.lane.b32.xlu0 %v740_v59, %s1529_s13  ;;  %1052 = vrot.lane.b32.xlu1 %v1801_v56, %s1531_s16 }
 0x271   :  { %1054 = vrot.lane.b32.xlu0 %v1832_v58, %s1531_s16  ;;  %1056 = vrot.lane.b32.xlu1 %v740_v59, %s1531_s16  ;;  %v1949_v59 = vld [vmem:[%s2021_s3] sm:$0xff] }
 0x275   :  { %1139 = vperm.xlu0 %1522, %v1136_v61   ;;  %1364 = vrot.lane.b32.xlu1 %v1130_v62, %s1526_s10 }
 0x279   :  { %1366 = vrot.lane.b32.xlu0 %v1131_v63, %s1526_s10  ;;  %1368 = vrot.lane.b32.xlu1 %v1132_v31, %s1526_s10 }
 0x27d   :  { %1370 = vrot.lane.b32.xlu0 %v1133_v0, %s1526_s10  ;;  %1372 = vrot.lane.b32.xlu1 %v1134_v1, %s1526_s10 }
 0x281   :  { %1374 = vrot.lane.b32.xlu0 %v1135_v2, %s1526_s10 }
 0x287   :  { %v760_v60 = vpop.permute.xlu0 %759  ;;  %v801_v3 = vpop.permute.xlu1 %800 }
 0x28b   :  { %v842_v53 = vpop.permute.xlu0 %841  ;;  %v883_v6 = vpop.permute.xlu1 %882 }
 0x28f   :  { %v924_v7 = vpop.permute.xlu0 %923  ;;  %v965_v8 = vpop.permute.xlu1 %964 }
 0x293   :  { %v1006_v9 = vpop.permute.xlu0 %1005  ;;  %v764_v10 = vpop.permute.xlu1 %763 }
 0x297   :  { %v1047_v11 = vpop.permute.xlu0 %1046  ;;  %v803_v12 = vpop.permute.xlu1 %802 }
 0x298   :  { %v812_v13 = vsel %vm102_vm2, %v801_v3, %v803_v12 }
 0x29b   :  { %v762_v14 = vpop.permute.xlu0 %761  ;;  %v844_v15 = vpop.permute.xlu1 %843 }
 0x29c   :  { %v771_v16 = vsel %vm60_vm1, %v760_v60, %v762_v14  ;;  %v772_v17 = vsel %vm60_vm1, %v762_v14, %v764_v10  ;;  %v853_v19 = vsel %vm144_vm3, %v842_v53, %v844_v15 }
 0x29d   :  { %v1463_v20 = vpack.c.bf16 %v772_v17, %v1793_v52  ;;  %v1465_v21 = vpack.c.bf16 %v771_v16, %v1798_v55  ;;  %v1469_v32 = vpack.c.bf16 %v853_v19, %v812_v13 }
 0x29f   :  { %v805_v22 = vpop.permute.xlu0 %804  ;;  %v885_v23 = vpop.permute.xlu1 %884  ;;  %1464 = vmatprep.subr.bf16.mxu1 %v1463_v20 }
 0x2a0   :  { %v813_v24 = vsel %vm102_vm2, %v803_v12, %v805_v22  ;;  %v894_v25 = vsel %vm186_vm4, %v883_v6, %v885_v23  ;;  %1466 = vmatpush1.bf16.msra.mxu1 %v1465_v21 }
 0x2a3   :  { %v846_v26 = vpop.permute.xlu0 %845  ;;  %v926_v27 = vpop.permute.xlu1 %925 }
 0x2a4   :  { %v854_v28 = vsel %vm144_vm3, %v844_v15, %v846_v26  ;;  %v935_v29 = vsel %vm228_vm5, %v924_v7, %v926_v27 }
 0x2a5   :  { %v1467_v30 = vpack.c.bf16 %v854_v28, %v813_v24  ;;  %v1473_v43 = vpack.c.bf16 %v935_v29, %v894_v25 }
 0x2a7   :  { %v887_v33 = vpop.permute.xlu0 %886  ;;  %v967_v34 = vpop.permute.xlu1 %966  ;;  %1468 = vmatprep.subr.bf16.mxu1 %v1467_v30 }
 0x2a8   :  { %v895_v35 = vsel %vm186_vm4, %v885_v23, %v887_v33  ;;  %v976_v36 = vsel %vm270_vm6, %v965_v8, %v967_v34  ;;  %1470 = vmatpush1.bf16.msra.mxu1 %v1469_v32 }
 0x2ab   :  { %v928_v37 = vpop.permute.xlu0 %927  ;;  %v1008_v39 = vpop.permute.xlu1 %1007 }
 0x2ac   :  { %v936_v40 = vsel %vm228_vm5, %v926_v27, %v928_v37  ;;  %v1017_v41 = vsel %vm312_vm7, %v1006_v9, %v1008_v39 }
 0x2ad   :  { %v1471_v42 = vpack.c.bf16 %v936_v40, %v895_v35  ;;  %v1477_v55 = vpack.c.bf16 %v1017_v41, %v976_v36 }
 0x2af   :  { %v969_v44 = vpop.permute.xlu0 %968  ;;  %v766_v45 = vpop.permute.xlu1 %765  ;;  %1472 = vmatprep.subr.bf16.mxu1 %v1471_v42 }
 0x2b0   :  { %v977_v46 = vsel %vm270_vm6, %v967_v34, %v969_v44  ;;  %v773_v47 = vsel %vm60_vm1, %v764_v10, %v766_v45  ;;  %1474 = vmatpush1.bf16.msra.mxu1 %v1473_v43 }
 0x2b1   :  { %v1481_v1 = vpack.c.bf16 %v773_v47, %v1796_v54 }
 0x2b3   :  { %v1010_v48 = vpop.permute.xlu0 %1009  ;;  %v1049_v49 = vpop.permute.xlu1 %1048 }
 0x2b4   :  { %v1018_v50 = vsel %vm312_vm7, %v1008_v39, %v1010_v48  ;;  %v1058_v51 = vsel %vm354_vm8, %v1047_v11, %v1049_v49 }
 0x2b5   :  { %v1475_v52 = vpack.c.bf16 %v1018_v50, %v977_v46 }
 0x2b7   :  { %v1941_v18 = vpop.permute.xlu0 %1050  ;;  %v807_v57 = vpop.permute.xlu1 %806  ;;  %1476 = vmatprep.subr.bf16.mxu1 %v1475_v52 }
 0x2b8   :  { %v1059_v4 = vsel %vm354_vm8, %v1049_v49, %v1941_v18  ;;  %v814_v38 = vsel %vm102_vm2, %v805_v22, %v807_v57  ;;  %1478 = vmatpush1.bf16.msra.mxu1 %v1477_v55 }
 0x2b9   :  { %1161 = vmatprep.subr.mxu1 %v1059_v4 }
 0x2bb   :  { %v768_v61 = vpop.permute.xlu0 %767  ;;  %v848_v62 = vpop.permute.xlu1 %847 }
 0x2bc   :  { %v774_v63 = vsel %vm60_vm1, %v766_v45, %v768_v61  ;;  %v855_v31 = vsel %vm144_vm3, %v846_v26, %v848_v62  ;;  %1162 = vmatpush1.msra.mxu1 %v1058_v51 }
 0x2bd   :  { %1412 = vmatmul.mubr.msk.f32.vlgmr.msra.gmra.mrb[2].mxu1 %vm433_vm9, %v1949_v59  ;;  %v1479_v0 = vpack.c.bf16 %v774_v63, %v1801_v56  ;;  %v1485_v56 = vpack.c.bf16 %v855_v31, %v814_v38 }
 0x2be   :  { %1351 = vmatprep.mubr.f32.mxu1 %v1530_v5 }
 0x2bf   :  { %v809_v2 = vpop.permute.xlu0 %808  ;;  %v889_v60 = vpop.permute.xlu1 %888  ;;  %1480 = vmatprep.subr.bf16.mxu0 %v1479_v0 }
 0x2c0   :  { %v815_v3 = vsel %vm102_vm2, %v807_v57, %v809_v2  ;;  %v896_v53 = vsel %vm186_vm4, %v887_v33, %v889_v60  ;;  %1482 = vmatpush1.bf16.msra.mxu0 %v1481_v1  ;;  %v1081_v33 = vld [vmem:[#allocation2 + $0x28] sm:$0xff] }
 0x2c3   :  { %v850_v6 = vpop.permute.xlu0 %849  ;;  %v930_v7 = vpop.permute.xlu1 %929 }
 0x2c4   :  { %v856_v8 = vsel %vm144_vm3, %v848_v62, %v850_v6  ;;  %v937_v9 = vsel %vm228_vm5, %v928_v37, %v930_v7 }
 0x2c5   :  { %v1483_v10 = vpack.c.bf16 %v856_v8, %v815_v3  ;;  %v1489_v19 = vpack.c.bf16 %v937_v9, %v896_v53 }
 0x2c7   :  { %v891_v11 = vpop.permute.xlu0 %890  ;;  %v971_v54 = vpop.permute.xlu1 %970  ;;  %1484 = vmatprep.subr.bf16.mxu0 %v1483_v10 }
 0x2c8   :  { %v897_v5 = vsel %vm186_vm4, %v889_v60, %v891_v11  ;;  %v978_v12 = vsel %vm270_vm6, %v969_v44, %v971_v54  ;;  %1486 = vmatpush1.bf16.msra.mxu0 %v1485_v56 }
 0x2cb   :  { %v932_v13 = vpop.permute.xlu0 %931  ;;  %v1012_v14 = vpop.permute.xlu1 %1011 }
 0x2cc   :  { %v938_v15 = vsel %vm228_vm5, %v930_v7, %v932_v13  ;;  %v1019_v16 = vsel %vm312_vm7, %v1010_v48, %v1012_v14 }
 0x2cd   :  { %v1487_v17 = vpack.c.bf16 %v938_v15, %v897_v5  ;;  %v1493_v29 = vpack.c.bf16 %v1019_v16, %v978_v12 }
 0x2cf   :  { %v973_v20 = vpop.permute.xlu0 %972  ;;  %v770_v21 = vpop.permute.xlu1 %769  ;;  %1488 = vmatprep.subr.bf16.mxu0 %v1487_v17 }
 0x2d0   :  { %v979_v22 = vsel %vm270_vm6, %v971_v54, %v973_v20  ;;  %v775_v23 = vsel %vm60_vm1, %v768_v61, %v770_v21  ;;  %787 = vst.msk [vmem:[#allocation2 + $0x58] sm:$0xff] %vm34_vm0, %v770_v21  ;;  %1490 = vmatpush1.bf16.msra.mxu0 %v1489_v19 }
 0x2d1   :  { %v1497_v39 = vpack.c.bf16 %v775_v23, %v1832_v58 }
 0x2d3   :  { %v1014_v24 = vpop.permute.xlu0 %1013  ;;  %v811_v25 = vpop.permute.xlu1 %810 }
 0x2d4   :  { %v1020_v26 = vsel %vm312_vm7, %v1012_v14, %v1014_v24  ;;  %v816_v27 = vsel %vm102_vm2, %v809_v2, %v811_v25  ;;  %828 = vst.msk [vmem:[#allocation2 + $0x88] sm:$0xff] %vm34_vm0, %v811_v25 }
 0x2d5   :  { %v1491_v28 = vpack.c.bf16 %v1020_v26, %v979_v22 }
 0x2d7   :  { %v852_v30 = vpop.permute.xlu0 %851  ;;  %v893_v32 = vpop.permute.xlu1 %892  ;;  %v1087_v34 = vld [vmem:[#allocation2 + $0x58] sm:$0xff]  ;;  %1492 = vmatprep.subr.bf16.mxu0 %v1491_v28 }
 0x2d8   :  { %v857_v35 = vsel %vm144_vm3, %v850_v6, %v852_v30  ;;  %869 = vst.msk [vmem:[#allocation2 + $0xb8] sm:$0xff] %vm34_vm0, %v852_v30  ;;  %v898_v36 = vsel %vm186_vm4, %v891_v11, %v893_v32  ;;  %910 = vst.msk [vmem:[#allocation2 + $0xe8] sm:$0xff] %vm34_vm0, %v893_v32  ;;  %v1495_v37 = vpack.c.bf16 %v1087_v34, %v1081_v33  ;;  %1494 = vmatpush1.bf16.msra.mxu0 %v1493_v29 }
 0x2d9   :  { %v1501_v50 = vpack.c.bf16 %v857_v35, %v816_v27 }
 0x2da   :  { %1496 = vmatprep.subr.bf16.mxu1 %v1495_v37 }
 0x2db   :  { %v934_v40 = vpop.permute.xlu0 %933  ;;  %1498 = vmatpush1.bf16.msra.mxu1 %v1497_v39  ;;  %v975_v41 = vpop.permute.xlu1 %974  ;;  %v1093_v46 = vld [vmem:[#allocation2 + $0x88] sm:$0xff] }
 0x2dc   :  { %v939_v42 = vsel %vm228_vm5, %v932_v13, %v934_v40  ;;  %951 = vst.msk [vmem:[#allocation2 + $0x118] sm:$0xff] %vm34_vm0, %v934_v40  ;;  %v980_v43 = vsel %vm270_vm6, %v973_v20, %v975_v41  ;;  %992 = vst.msk [vmem:[#allocation2 + $0x148] sm:$0xff] %vm34_vm0, %v975_v41 }
 0x2dd   :  { %v1505_v62 = vpack.c.bf16 %v939_v42, %v898_v36 }
 0x2df   :  { %v1016_v44 = vpop.permute.xlu0 %1015  ;;  %v1053_v45 = vpop.permute.xlu1 %1052  ;;  %v1099_v47 = vld [vmem:[#allocation2 + $0xb8] sm:$0xff]  ;;  %v1105_v55 = vld [vmem:[#allocation2 + $0xe8] sm:$0xff] }
 0x2e0   :  { %v1021_v48 = vsel %vm312_vm7, %v1014_v24, %v1016_v44  ;;  %1033 = vst.msk [vmem:[#allocation2 + $0x178] sm:$0xff] %vm34_vm0, %v1016_v44  ;;  %v1060_v58 = vsel %vm354_vm8, %v1941_v18, %v1053_v45  ;;  %v1499_v49 = vpack.c.bf16 %v1099_v47, %v1093_v46 }
 0x2e1   :  { %v1509_v0 = vpack.c.bf16 %v1021_v48, %v980_v43 }
 0x2e2   :  { %1500 = vmatprep.subr.bf16.mxu1 %v1499_v49 }
 0x2e3   :  { %v1055_v51 = vpop.permute.xlu0 %1054  ;;  %1502 = vmatpush1.bf16.msra.mxu1 %v1501_v50  ;;  %v1057_v52 = vpop.permute.xlu1 %1056  ;;  %v1111_v57 = vld [vmem:[#allocation2 + $0x118] sm:$0xff]  ;;  %v1117_v18 = vld [vmem:[#allocation2 + $0x148] sm:$0xff] }
 0x2e4   :  { %v1061_v4 = vsel %vm354_vm8, %v1053_v45, %v1055_v51  ;;  %v1062_v38 = vsel %vm354_vm8, %v1055_v51, %v1057_v52  ;;  %1074 = vst.msk [vmem:[#allocation2 + $0x1a8] sm:$0xff] %vm34_vm0, %v1057_v52  ;;  %v1503_v61 = vpack.c.bf16 %v1111_v57, %v1105_v55 }
 0x2e5   :  { %1232 = vmatprep.subr.mxu0 %v1061_v4 }
 0x2e6   :  { %1504 = vmatprep.subr.bf16.mxu1 %v1503_v61  ;;  %1233 = vmatpush1.msra.mxu0 %v1060_v58 }
 0x2e7   :  { %1506 = vmatpush1.bf16.msra.mxu1 %v1505_v62  ;;  %v1123_v63 = vld [vmem:[#allocation2 + $0x178] sm:$0xff]  ;;  %1413 = vmatmul.mubr.msk.f32.vlgmr.msra.gmra.mrb[4].mxu0 %vm433_vm9, %v1949_v59  ;;  %v1365_v2 = vpop.permute.xlu1 %1364 }
 0x2e8   :  { %v1507_v31 = vpack.c.bf16 %v1123_v63, %v1117_v18 }
 0x2ea   :  { %1508 = vmatprep.subr.bf16.mxu1 %v1507_v31 }
 0x2eb   :  { %1510 = vmatpush1.bf16.msra.mxu1 %v1509_v0  ;;  %v1129_v1 = vld [vmem:[#allocation2 + $0x1a8] sm:$0xff]  ;;  %v1369_v53 = vpop.permute.xlu1 %1368 }
 0x2ec   :  { %1303 = vmatprep.subr.mxu1 %v1129_v1 }
 0x2ef   :  { %1304 = vmatpush1.msra.mxu1 %v1062_v38  ;;  %v1373_v13 = vpop.permute.xlu1 %1372 }
 0x2f0   :  { %1414 = vmatmul.mubr.msk.f32.vlgmr.msra.gmra.mrb[4].mxu1 %vm433_vm9, %v1949_v59 }
 0x2f4   :  { %v1140_v60 = vpop.permute.xlu0 %1139 }
 0x2f8   :  { %v1367_v3 = vpop.permute.xlu0 %1366 }
 0x2f9   :  { %v1376_v7 = vsel %vm186_vm4, %v1365_v2, %v1367_v3  ;;  %v1377_v10 = vsel %vm186_vm4, %v1367_v3, %v1369_v53 }
 0x2fc   :  { %v1371_v59 = vpop.permute.xlu0 %1370 }
 0x2fd   :  { %v1378_v14 = vsel %vm186_vm4, %v1369_v53, %v1371_v59  ;;  %v1379_v16 = vsel %vm186_vm4, %v1371_v59, %v1373_v13 }
 0x300   :  { %v1375_v25 = vpop.permute.xlu0 %1374 }
 0x301   :  { %v1380_v27 = vsel %vm186_vm4, %v1373_v13, %v1375_v25 }
 0x390   :  { %v1211_v6 = vpop.f32.mrb[2].mxu1 }
 0x391   :  { %v1212_v8 = vadd.f32 %v1211_v6, %v1140_v60  ;;  %v1213_v9 = vpop.f32.mrb[3].mxu1 }
 0x392   :  { %v1214_v56 = vadd.f32 %v1213_v9, %v1140_v60 }
 0x393   :  { %v1387_v11 = vadd.f32 %v1376_v7, %v1212_v8 }
 0x394   :  { %v1388_v54 = vadd.f32 %v1377_v10, %v1214_v56 }
 0x395   :  { %v1393_v5 = vmax.f32 %v1387_v11, 0.0 }
 0x396   :  { %v1394_v12 = vmax.f32 %v1388_v54, 0.0 }
 0x397   :  { %1399 = vst [vmem:[%s2022_s6] sm:$0xff] %v1393_v5 }
 0x398   :  { %1400 = vst [vmem:[%s2022_s6 + $0x8] sm:$0xff] %v1394_v12 }
 0x3ba   :  { %v1282_v15 = vpop.f32.mrb[4].mxu0 }
 0x3bb   :  { %v1283_v17 = vadd.f32 %v1282_v15, %v1140_v60  ;;  %v1284_v19 = vpop.f32.mrb[5].mxu0 }
 0x3bc   :  { %v1285_v20 = vadd.f32 %v1284_v19, %v1140_v60 }
 0x3bd   :  { %v1389_v21 = vadd.f32 %v1378_v14, %v1283_v17 }
 0x3be   :  { %v1390_v22 = vadd.f32 %v1379_v16, %v1285_v20 }
 0x3bf   :  { %v1395_v23 = vmax.f32 %v1389_v21, 0.0 }
 0x3c0   :  { %v1396_v24 = vmax.f32 %v1390_v22, 0.0 }
 0x3c1   :  { %1401 = vst [vmem:[%s2022_s6 + $0x10] sm:$0xff] %v1395_v23 }
 0x3c2   :  { %1402 = vst [vmem:[%s2022_s6 + $0x18] sm:$0xff] %v1396_v24 }
 0x3c3   :  { %v1353_v26 = vpop.f32.mrb[4].mxu1 }
 0x3c4   :  { %v1354_v28 = vadd.f32 %v1353_v26, %v1140_v60  ;;  %v1355_v29 = vpop.f32.mrb[5].mxu1 }
 0x3c5   :  { %v1356_v30 = vadd.f32 %v1355_v29, %v1140_v60 }
 0x3c6   :  { %v1391_v32 = vadd.f32 %v1380_v27, %v1354_v28 }
 0x3c7   :  { %v1392_v33 = vadd.f32 %v1375_v25, %v1356_v30 }
 0x3c8   :  { %v1397_v34 = vmax.f32 %v1391_v32, 0.0 }
 0x3c9   :  { %v1398_v35 = vmax.f32 %v1392_v33, 0.0 }
 0x3ca   :  { %1403 = vst [vmem:[%s2022_s6 + $0x20] sm:$0xff] %v1397_v34 }
 0x3cb   :  { %1404 = vst.msk [vmem:[%s2022_s6 + $0x28] sm:$0xff] %vm34_vm0, %v1398_v35 }

</bundles_post_ra>
